<compile_context>
chip_gen: v7x
topology: tpu7x:2x2x1
jax: 0.10.0
libtpu: 0.0.40
codegen_flags: <defaults>
</compile_context>

<pallas_src>
import math
import functools

import jax
import jax.numpy as jnp
from jax.experimental import pallas as pl
from jax.experimental.pallas import tpu as pltpu


# -----------------------------------------------------------------------------
# Pallas kernel: one grid step == one block of Bt graphs.
# -----------------------------------------------------------------------------
def _attention_kernel(x_ref, adj_ref, w_ref, b_ref, v_ref, a_ref,
                      *, num_heads, attn_dim, out_dim, use_bf16):
    f32 = jnp.float32
    x = x_ref[...].astype(f32)          # (Bt, N, F)
    adj = adj_ref[...].astype(f32)      # (Bt, N, N)
    bt, n, f = x.shape

    mm_dtype = jnp.bfloat16 if use_bf16 else f32

    # --- DenseGCNConv normalization: self loops + symmetric degree scaling ---
    # single 2-D iota comparison, broadcast into the where (VPU / vreg savings)
    row = jax.lax.broadcasted_iota(jnp.int32, (n, n), 0)
    col = jax.lax.broadcasted_iota(jnp.int32, (n, n), 1)
    eye2d = (row == col)[None, :, :]                               # (1, N, N) bool
    adj_sl = jnp.where(eye2d, 1.0, adj)                            # adj[i,i] = 1
    deg = jnp.sum(adj_sl, axis=-1, keepdims=True)                  # (Bt, N, 1)
    dinv = jax.lax.rsqrt(jnp.maximum(deg, 1.0))                    # EUP rsqrt

    # --- fused Q|K|V projection: one x@W pass, one propagation pass ---------
    # D^-1/2 A_sl D^-1/2 @ (xW)  ==  dinv * (A_sl @ (dinv * xW))   (no transposes)
    w = w_ref[...].astype(mm_dtype)                                # (F, 2*attn+out)
    xw = jnp.dot(x.reshape(bt * n, f).astype(mm_dtype), w,
                 preferred_element_type=f32).reshape(bt, n, -1)    # (Bt, N, Dtot)
    xw_scaled = (xw * dinv).astype(mm_dtype)
    prop = jnp.einsum('bij,bjd->bid', adj_sl.astype(mm_dtype), xw_scaled,
                      preferred_element_type=f32)
    h = prop * dinv + b_ref[...].reshape(1, 1, -1)                 # (Bt, N, Dtot)

    q = h[..., :attn_dim]
    k = h[..., attn_dim:2 * attn_dim]
    v = h[..., 2 * attn_dim:]
    # lane-dense store: (Bt, 1, N*out_dim) slab
    v_ref[...] = v.reshape(bt, 1, n * out_dim).astype(v_ref.dtype)

    # --- multi-head attention scores, tanh, mean over heads, symmetrize -----
    ds = attn_dim // num_heads
    scale = 1.0 / math.sqrt(out_dim)    # reference scales by sqrt(out_dim)
    acc = None
    for hd in range(num_heads):         # small static loop; dots issued back-to-back
        qh = q[..., hd * ds:(hd + 1) * ds].astype(mm_dtype)
        kh = k[..., hd * ds:(hd + 1) * ds].astype(mm_dtype)
        s = jnp.einsum('bnd,bmd->bnm', qh, kh,
                       preferred_element_type=f32)                 # no K^T materialized
        t = jnp.tanh(s * scale)
        acc = t if acc is None else acc + t                        # no zeros init
    # fold 1/num_heads (head mean) and 0.5 (symmetrize) into one constant
    a = (acc + jnp.swapaxes(acc, -1, -2)) * (0.5 / num_heads)
    # lane-dense store: (Bt, 1, N*N) slab
    a_ref[...] = a.reshape(bt, 1, n * n).astype(a_ref.dtype)


# -----------------------------------------------------------------------------
# Wrapper
# -----------------------------------------------------------------------------
def attention_pallas(x, adj, params, *, num_heads, attn_dim, out_dim,
                     batch_block=None, use_bf16=False, adj_bf16_io=False):
    B, N, F = x.shape

    # batch-block policy: exactly 2 even blocks when possible (keeps both v7x
    # TCs busy, amortizes per-step overhead everywhere), else a single block.
    if batch_block is None:
        Bt = B // 2 if (B >= 4 and B % 2 == 0) else B
    else:
        Bt = max(1, min(batch_block, B))
        while B % Bt:
            Bt -= 1
    num_blocks = B // Bt

    # generation-aware VMEM limit (~3/4 of physical, capped at 100 MiB):
    # ~48 MiB on v7x (64 MiB/TC), ~96 MiB on v5e/v6e (128 MiB).
    try:
        vmem_cap = pltpu.get_tpu_info().vmem_capacity_bytes
    except Exception:
        vmem_cap = 64 * 1024 * 1024
    vmem_limit = min((vmem_cap * 3) // 4, 100 * 1024 * 1024)

    # fused Q|K|V parameters
    w_fused = jnp.concatenate([params["wq"], params["wk"], params["wv"]], axis=1)
    b_fused = jnp.concatenate([params["bq"], params["bk"], params["bv"]], axis=1)
    Dtot = w_fused.shape[1]

    adj_in = adj.astype(jnp.bfloat16) if adj_bf16_io else adj  # 0/1 adj is exact in bf16
    out_dtype = x.dtype

    kernel = functools.partial(_attention_kernel,
                               num_heads=num_heads,
                               attn_dim=attn_dim,
                               out_dim=out_dim,
                               use_bf16=use_bf16)

    grid_spec = pltpu.PrefetchScalarGridSpec(
        num_scalar_prefetch=0,
        grid=(num_blocks,),
        in_specs=[
            pl.BlockSpec((Bt, N, F), lambda b: (b, 0, 0)),           # x
            pl.BlockSpec((Bt, N, N), lambda b: (b, 0, 0)),           # adj
            pl.BlockSpec((F, Dtot), lambda b: (0, 0)),               # fused W
            pl.BlockSpec((1, Dtot), lambda b: (0, 0)),               # fused b
        ],
        out_specs=[
            pl.BlockSpec((Bt, 1, N * out_dim), lambda b: (b, 0, 0)),  # V (lane-dense)
            pl.BlockSpec((Bt, 1, N * N), lambda b: (b, 0, 0)),        # A (lane-dense)
        ],
    )

    v_flat, a_flat = pl.pallas_call(
        kernel,
        out_shape=(
            jax.ShapeDtypeStruct((B, 1, N * out_dim), out_dtype),
            jax.ShapeDtypeStruct((B, 1, N * N), out_dtype),
        ),
        grid_spec=grid_spec,
        compiler_params=pltpu.CompilerParams(
            dimension_semantics=("parallel",),
            vmem_limit_bytes=int(vmem_limit)),
    )(x, adj_in, w_fused, b_fused)

    # layout plumbing back to the module's output shapes (outside the kernel)
    V = v_flat.reshape(B, N, out_dim)
    A = a_flat.reshape(B, N, N)
    return V, A


# -----------------------------------------------------------------------------
# Pure-JAX reference (mirrors the PyTorch module) for a correctness check
# -----------------------------------------------------------------------------
def attention_ref(x, adj, params, *, num_heads, attn_dim, out_dim):
    def gcn(w, b):
        _, N, _ = adj.shape
        eye = jnp.eye(N, dtype=adj.dtype)[None]
        adj_sl = jnp.where(eye > 0, 1.0, adj)
        deg = jnp.maximum(adj_sl.sum(-1), 1.0)
        dinv = deg ** -0.5
        adj_n = dinv[:, :, None] * adj_sl * dinv[:, None, :]
        return adj_n @ (x @ w) + b

    Q = gcn(params["wq"], params["bq"])
    K = gcn(params["wk"], params["bk"])
    V = gcn(params["wv"], params["bv"])
    ds = attn_dim // num_heads
    Qh = jnp.stack(jnp.split(Q, num_heads, axis=2), 0)   # (H, B, N, ds)
    Kh = jnp.stack(jnp.split(K, num_heads, axis=2), 0)
    A = jnp.tanh(jnp.einsum("hbnd,hbmd->hbnm", Qh, Kh) / math.sqrt(out_dim))
    A = A.mean(0)
    A = (A + jnp.swapaxes(A, -1, -2)) / 2
    return V, A


# -----------------------------------------------------------------------------
if __name__ == "__main__":
    B, N = 4, 16
    in_dim, attn_dim, out_dim, num_heads = 8, 16, 8, 4

    key = jax.random.PRNGKey(0)
    kx, kadj, kq, kk, kv, kbq, kbk, kbv = jax.random.split(key, 8)

    x = jax.random.normal(kx, (B, N, in_dim), jnp.float32)

    # random symmetric 0/1 adjacency (diagonal irrelevant: GCN adds self loops)
    a_rand = jax.random.uniform(kadj, (B, N, N))
    adj = (a_rand + jnp.swapaxes(a_rand, -1, -2) > 1.0).astype(jnp.float32)

    def glorot(k, shape):
        lim = math.sqrt(6.0 / (shape[0] + shape[1]))
        return jax.random.uniform(k, shape, jnp.float32, -lim, lim)

    params = {
        "wq": glorot(kq, (in_dim, attn_dim)),
        "bq": jax.random.normal(kbq, (1, attn_dim), jnp.float32) * 0.01,
        "wk": glorot(kk, (in_dim, attn_dim)),
        "bk": jax.random.normal(kbk, (1, attn_dim), jnp.float32) * 0.01,
        "wv": glorot(kv, (in_dim, out_dim)),
        "bv": jax.random.normal(kbv, (1, out_dim), jnp.float32) * 0.01,
    }

    V, A = attention_pallas(x, adj, params,
                            num_heads=num_heads, attn_dim=attn_dim,
                            out_dim=out_dim)
    jax.block_until_ready((V, A))

    V_ref, A_ref = attention_ref(x, adj, params,
                                 num_heads=num_heads, attn_dim=attn_dim,
                                 out_dim=out_dim)

    assert jnp.allclose(V, V_ref, atol=1e-4, rtol=1e-4), "V mismatch"
    assert jnp.allclose(A, A_ref, atol=1e-4, rtol=1e-4), "A mismatch"
    print("KERNEL_OK")
</pallas_src>

<mosaic_0001>
module attributes {stable_mosaic.version = 11 : i64} {
  func.func @_attention_kernel(%arg0: i32, %arg1: memref<2x16x8xf32, #tpu.memory_space<vmem>>, %arg2: memref<2x16x16xf32, #tpu.memory_space<vmem>>, %arg3: memref<8x40xf32, #tpu.memory_space<vmem>>, %arg4: memref<1x40xf32, #tpu.memory_space<vmem>>, %arg5: memref<2x1x128xf32, #tpu.memory_space<vmem>>, %arg6: memref<2x1x256xf32, #tpu.memory_space<vmem>>) attributes {dimension_semantics = [#tpu.dimension_semantics<parallel>], iteration_bounds = array<i64: 2>, scalar_prefetch = 0 : i64, scratch_operands = 0 : i64, tpu.core_type = #tpu.core_type<tc>, window_params = [{transform_indices = @transform_0, window_bounds = array<i64: 2, 16, 8>}, {transform_indices = @transform_1, window_bounds = array<i64: 2, 16, 16>}, {pipeline_mode = #tpu.pipeline_mode<synchronous>, transform_indices = @transform_2, window_bounds = array<i64: 8, 40>}, {pipeline_mode = #tpu.pipeline_mode<synchronous>, transform_indices = @transform_3, window_bounds = array<i64: 1, 40>}, {transform_indices = @transform_4, window_bounds = array<i64: 2, 1, 128>}, {transform_indices = @transform_5, window_bounds = array<i64: 2, 1, 256>}]} {
    %c0 = arith.constant 0 : index
    %c0_0 = arith.constant 0 : index
    %c0_1 = arith.constant 0 : index
    %0 = vector.load %arg1[%c0, %c0_0, %c0_1] : memref<2x16x8xf32, #tpu.memory_space<vmem>>, vector<2x16x8xf32>
    %c0_2 = arith.constant 0 : index
    %c0_3 = arith.constant 0 : index
    %c0_4 = arith.constant 0 : index
    %1 = vector.load %arg2[%c0_2, %c0_3, %c0_4] : memref<2x16x16xf32, #tpu.memory_space<vmem>>, vector<2x16x16xf32>
    %2 = tpu.iota {dimensions = array<i32: 0>} : vector<16x16xi32>
    %3 = tpu.iota {dimensions = array<i32: 1>} : vector<16x16xi32>
    %4 = arith.cmpi eq, %2, %3 : vector<16x16xi32>
    %5 = vector.shape_cast %4 : vector<16x16xi1> to vector<1x16x16xi1>
    %cst = arith.constant 1.000000e+00 : f32
    %6 = vector.shape_cast %5 : vector<1x16x16xi1> to vector<1x16x16xi1>
    %7 = vector.broadcast %6 : vector<1x16x16xi1> to vector<2x16x16xi1>
    %8 = vector.broadcast %cst : f32 to vector<2x16x16xf32>
    %9 = arith.select %7, %8, %1 : vector<2x16x16xi1>, vector<2x16x16xf32>
    %cst_5 = arith.constant dense<0.000000e+00> : vector<2x16xf32>
    %10 = vector.multi_reduction <add>, %9, %cst_5 [2] : vector<2x16x16xf32> to vector<2x16xf32>
    %11 = vector.shape_cast %10 : vector<2x16xf32> to vector<2x16x1xf32>
    %cst_6 = arith.constant 1.000000e+00 : f32
    %12 = vector.broadcast %cst_6 : f32 to vector<2x16x1xf32>
    %13 = arith.maximumf %11, %12 : vector<2x16x1xf32>
    %14 = math.rsqrt %13 : vector<2x16x1xf32>
    %c0_7 = arith.constant 0 : index
    %c0_8 = arith.constant 0 : index
    %15 = vector.load %arg3[%c0_7, %c0_8] : memref<8x40xf32, #tpu.memory_space<vmem>>, vector<8x40xf32>
    %16 = vector.shape_cast %0 : vector<2x16x8xf32> to vector<32x8xf32>
    %cst_9 = arith.constant dense<0.000000e+00> : vector<32x40xf32>
    %17 = tpu.matmul %16, %15, %cst_9 {dimension_numbers = #tpu.dot_dimension_numbers<[1], [0], [0], [1], [0, 0, 1, 1], [], []>} : vector<32x8xf32>, vector<8x40xf32>, vector<32x40xf32> -> vector<32x40xf32>
    %18 = vector.shape_cast %17 : vector<32x40xf32> to vector<2x16x40xf32>
    %19 = vector.broadcast %14 : vector<2x16x1xf32> to vector<2x16x40xf32>
    %20 = arith.mulf %18, %19 : vector<2x16x40xf32>
    "tpu.trace_start"() <{level = 10 : i32, message = "bij,bjd->bid"}> : () -> ()
    %cst_10 = arith.constant dense<0.000000e+00> : vector<2x16x40xf32>
    %21 = tpu.matmul %9, %20, %cst_10 {dimension_numbers = #tpu.dot_dimension_numbers<[2], [1], [1], [2], [0, 0, 0, 1, 1, 2], [0], [0]>} : vector<2x16x16xf32>, vector<2x16x40xf32>, vector<2x16x40xf32> -> vector<2x16x40xf32>
    "tpu.trace_stop"() : () -> ()
    %22 = vector.broadcast %14 : vector<2x16x1xf32> to vector<2x16x40xf32>
    %23 = arith.mulf %21, %22 : vector<2x16x40xf32>
    %c0_11 = arith.constant 0 : index
    %c0_12 = arith.constant 0 : index
    %24 = vector.load %arg4[%c0_11, %c0_12] : memref<1x40xf32, #tpu.memory_space<vmem>>, vector<1x40xf32>
    %25 = vector.shape_cast %24 : vector<1x40xf32> to vector<1x1x40xf32>
    %26 = vector.broadcast %25 : vector<1x1x40xf32> to vector<2x16x40xf32>
    %27 = arith.addf %23, %26 : vector<2x16x40xf32>
    %28 = vector.extract_strided_slice %27 {offsets = [0, 0, 0], sizes = [2, 16, 16], strides = [1, 1, 1]} : vector<2x16x40xf32> to vector<2x16x16xf32>
    %29 = vector.extract_strided_slice %27 {offsets = [0, 0, 16], sizes = [2, 16, 16], strides = [1, 1, 1]} : vector<2x16x40xf32> to vector<2x16x16xf32>
    %30 = vector.extract_strided_slice %27 {offsets = [0, 0, 32], sizes = [2, 16, 8], strides = [1, 1, 1]} : vector<2x16x40xf32> to vector<2x16x8xf32>
    %31 = vector.shape_cast %30 : vector<2x16x8xf32> to vector<2x1x128xf32>
    %c0_13 = arith.constant 0 : index
    %c0_14 = arith.constant 0 : index
    %c0_15 = arith.constant 0 : index
    %32 = vector.load %arg5[%c0_13, %c0_14, %c0_15] : memref<2x1x128xf32, #tpu.memory_space<vmem>>, vector<2x1x128xf32>
    tpu.vector_store %arg5[%c0_13, %c0_14, %c0_15], %31 {strides = array<i32>} : memref<2x1x128xf32, #tpu.memory_space<vmem>>, vector<2x1x128xf32>,
    %33 = vector.extract_strided_slice %28 {offsets = [0, 0, 0], sizes = [2, 16, 4], strides = [1, 1, 1]} : vector<2x16x16xf32> to vector<2x16x4xf32>
    %34 = vector.extract_strided_slice %29 {offsets = [0, 0, 0], sizes = [2, 16, 4], strides = [1, 1, 1]} : vector<2x16x16xf32> to vector<2x16x4xf32>
    "tpu.trace_start"() <{level = 10 : i32, message = "bnd,bmd->bnm"}> : () -> ()
    %cst_16 = arith.constant dense<0.000000e+00> : vector<2x16x16xf32>
    %35 = tpu.matmul %33, %34, %cst_16 {dimension_numbers = #tpu.dot_dimension_numbers<[2], [2], [1], [1], [0, 0, 0, 1, 1, 1], [0], [0]>} : vector<2x16x4xf32>, vector<2x16x4xf32>, vector<2x16x16xf32> -> vector<2x16x16xf32>
    "tpu.trace_stop"() : () -> ()
    %cst_17 = arith.constant 0.353553385 : f32
    %36 = vector.broadcast %cst_17 : f32 to vector<2x16x16xf32>
    %37 = arith.mulf %35, %36 : vector<2x16x16xf32>
    %38 = math.tanh %37 : vector<2x16x16xf32>
    %39 = vector.extract_strided_slice %28 {offsets = [0, 0, 4], sizes = [2, 16, 4], strides = [1, 1, 1]} : vector<2x16x16xf32> to vector<2x16x4xf32>
    %40 = vector.extract_strided_slice %29 {offsets = [0, 0, 4], sizes = [2, 16, 4], strides = [1, 1, 1]} : vector<2x16x16xf32> to vector<2x16x4xf32>
    "tpu.trace_start"() <{level = 10 : i32, message = "bnd,bmd->bnm"}> : () -> ()
    %cst_18 = arith.constant dense<0.000000e+00> : vector<2x16x16xf32>
    %41 = tpu.matmul %39, %40, %cst_18 {dimension_numbers = #tpu.dot_dimension_numbers<[2], [2], [1], [1], [0, 0, 0, 1, 1, 1], [0], [0]>} : vector<2x16x4xf32>, vector<2x16x4xf32>, vector<2x16x16xf32> -> vector<2x16x16xf32>
    "tpu.trace_stop"() : () -> ()
    %cst_19 = arith.constant 0.353553385 : f32
    %42 = vector.broadcast %cst_19 : f32 to vector<2x16x16xf32>
    %43 = arith.mulf %41, %42 : vector<2x16x16xf32>
    %44 = math.tanh %43 : vector<2x16x16xf32>
    %45 = arith.addf %38, %44 : vector<2x16x16xf32>
    %46 = vector.extract_strided_slice %28 {offsets = [0, 0, 8], sizes = [2, 16, 4], strides = [1, 1, 1]} : vector<2x16x16xf32> to vector<2x16x4xf32>
    %47 = vector.extract_strided_slice %29 {offsets = [0, 0, 8], sizes = [2, 16, 4], strides = [1, 1, 1]} : vector<2x16x16xf32> to vector<2x16x4xf32>
    "tpu.trace_start"() <{level = 10 : i32, message = "bnd,bmd->bnm"}> : () -> ()
    %cst_20 = arith.constant dense<0.000000e+00> : vector<2x16x16xf32>
    %48 = tpu.matmul %46, %47, %cst_20 {dimension_numbers = #tpu.dot_dimension_numbers<[2], [2], [1], [1], [0, 0, 0, 1, 1, 1], [0], [0]>} : vector<2x16x4xf32>, vector<2x16x4xf32>, vector<2x16x16xf32> -> vector<2x16x16xf32>
    "tpu.trace_stop"() : () -> ()
    %cst_21 = arith.constant 0.353553385 : f32
    %49 = vector.broadcast %cst_21 : f32 to vector<2x16x16xf32>
    %50 = arith.mulf %48, %49 : vector<2x16x16xf32>
    %51 = math.tanh %50 : vector<2x16x16xf32>
    %52 = arith.addf %45, %51 : vector<2x16x16xf32>
    %53 = vector.extract_strided_slice %28 {offsets = [0, 0, 12], sizes = [2, 16, 4], strides = [1, 1, 1]} : vector<2x16x16xf32> to vector<2x16x4xf32>
    %54 = vector.extract_strided_slice %29 {offsets = [0, 0, 12], sizes = [2, 16, 4], strides = [1, 1, 1]} : vector<2x16x16xf32> to vector<2x16x4xf32>
    "tpu.trace_start"() <{level = 10 : i32, message = "bnd,bmd->bnm"}> : () -> ()
    %cst_22 = arith.constant dense<0.000000e+00> : vector<2x16x16xf32>
    %55 = tpu.matmul %53, %54, %cst_22 {dimension_numbers = #tpu.dot_dimension_numbers<[2], [2], [1], [1], [0, 0, 0, 1, 1, 1], [0], [0]>} : vector<2x16x4xf32>, vector<2x16x4xf32>, vector<2x16x16xf32> -> vector<2x16x16xf32>
    "tpu.trace_stop"() : () -> ()
    %cst_23 = arith.constant 0.353553385 : f32
    %56 = vector.broadcast %cst_23 : f32 to vector<2x16x16xf32>
    %57 = arith.mulf %55, %56 : vector<2x16x16xf32>
    %58 = math.tanh %57 : vector<2x16x16xf32>
    %59 = arith.addf %52, %58 : vector<2x16x16xf32>
    %60 = tpu.transpose %59, [0, 2, 1] : vector<2x16x16xf32> -> vector<2x16x16xf32>
    %61 = arith.addf %59, %60 : vector<2x16x16xf32>
    %cst_24 = arith.constant 1.250000e-01 : f32
    %62 = vector.broadcast %cst_24 : f32 to vector<2x16x16xf32>
    %63 = arith.mulf %61, %62 : vector<2x16x16xf32>
    %64 = vector.shape_cast %63 : vector<2x16x16xf32> to vector<2x1x256xf32>
    %c0_25 = arith.constant 0 : index
    %c0_26 = arith.constant 0 : index
    %c0_27 = arith.constant 0 : index
    %65 = vector.load %arg6[%c0_25, %c0_26, %c0_27] : memref<2x1x256xf32, #tpu.memory_space<vmem>>, vector<2x1x256xf32>
    tpu.vector_store %arg6[%c0_25, %c0_26, %c0_27], %64 {strides = array<i32>} : memref<2x1x256xf32, #tpu.memory_space<vmem>>, vector<2x1x256xf32>,
    return
  }
  func.func @transform_0(%arg0: i32) -> (i32, i32, i32) {
    %c0_i32 = arith.constant 0 : i32
    %c0_i32_0 = arith.constant 0 : i32
    %c0_i32_1 = arith.constant 0 : i32
    return %arg0, %c0_i32, %c0_i32_0 : i32, i32, i32
  }
  func.func @transform_1(%arg0: i32) -> (i32, i32, i32) {
    %c0_i32 = arith.constant 0 : i32
    %c0_i32_0 = arith.constant 0 : i32
    %c0_i32_1 = arith.constant 0 : i32
    return %arg0, %c0_i32, %c0_i32_0 : i32, i32, i32
  }
  func.func @transform_2(%arg0: i32) -> (i32, i32) {
    %c0_i32 = arith.constant 0 : i32
    %c0_i32_0 = arith.constant 0 : i32
    %c0_i32_1 = arith.constant 0 : i32
    return %c0_i32, %c0_i32_0 : i32, i32
  }
  func.func @transform_3(%arg0: i32) -> (i32, i32) {
    %c0_i32 = arith.constant 0 : i32
    %c0_i32_0 = arith.constant 0 : i32
    %c0_i32_1 = arith.constant 0 : i32
    return %c0_i32, %c0_i32_0 : i32, i32
  }
  func.func @transform_4(%arg0: i32) -> (i32, i32, i32) {
    %c0_i32 = arith.constant 0 : i32
    %c0_i32_0 = arith.constant 0 : i32
    %c0_i32_1 = arith.constant 0 : i32
    return %arg0, %c0_i32, %c0_i32_0 : i32, i32, i32
  }
  func.func @transform_5(%arg0: i32) -> (i32, i32, i32) {
    %c0_i32 = arith.constant 0 : i32
    %c0_i32_0 = arith.constant 0 : i32
    %c0_i32_1 = arith.constant 0 : i32
    return %arg0, %c0_i32, %c0_i32_0 : i32, i32, i32
  }
}

</mosaic_0001>

<bundles_post_ra>
// kernel: tpu_custom_call.1
= control target key start
LH: loop header
LB: loop body
LE: loop exit
PB: predicated region body
PF: predicated region fallthrough
CT: control target
= control target key end

     0   :  { %11 = vsyncpa [#allocation3], 0  ;;  %s3382_s0 = inlined_call_operand.vmem [shape: f32[4,16,8], index: 0, kind: input, shape index: {}]   ;;  %s3383_s1 = inlined_call_operand.vmem [shape: f32[4,16,16], index: 1, kind: input, shape index: {}]   ;;  %s3384_s2 = inlined_call_operand.vmem [shape: f32[8,40], index: 2, kind: input, shape index: {}]   ;;  %s3385_s3 = inlined_call_operand.vmem [shape: f32[1,40], index: 3, kind: input, shape index: {}]   ;;  %s3386_s4 = inlined_call_operand.hbm [shape: f32[4,1,128], index: 4, kind: output, shape index: {0}]   ;;  %s3387_s5 = inlined_call_operand.hbm [shape: f32[4,1,256], index: 5, kind: output, shape index: {1}]  }
   0x1   :  { %13 = vsyncpa [#allocation3 + $0x1], 0 }
   0x2   :  { %14 = vsyncpa [#allocation5], 0 }
   0x3   :  { %16 = vsyncpa [#allocation5 + $0x1], 0  ;;  %s2872_s18 = smov 0   ;;  %s2874_s19 = smov 0  }
   0x4   :  { %s2876_s20 = smov 0   ;;  %s2878_s21 = smov 0  }
   0x5 LB: > { %s2893_s22 = sadd.s32 4294967295, %s2813_s21   ;;  %s2324_s23 = sadd.s32 4294967294, %s2813_s21   ;;  %s2813_s21 = sphi %s2878_s21, %s3397_s21   ;;  %s2809_s20 = sphi %s2876_s20, %s3396_s20   ;;  %s2805_s19 = sphi %s2874_s19, %s3395_s19   ;;  %s2801_s18 = sphi %s2872_s18, %s3394_s18  }
   0x6   : > { %s2897_s24 = sadd.s32 1, %s2813_s21   ;;  %s123_s25 = sadd.s32 1, %s2809_s20 }
   0x7   : > { %s120_s26 = ssub.s32 %s2813_s21, %s2897_s24  ;;  %p133_p0 = scmp.ne.s32.totalorder %s2809_s20, %s2805_s19 }
   0x8   : > { %p121_p1 = scmp.eq.s32.totalorder %s120_s26, 0  ;;  %p134_p2 = scmp.eq.s32.totalorder %s2893_s22, 1 }
   0x9   : > { %p139_p3 = scmp.ne.s32.totalorder %s2805_s19, %s2801_s18  ;;  %p140_p4 = scmp.eq.s32.totalorder %s2324_s23, 1 }
   0xa   : > { %s2908_s27 = scalar_select %p121_p1, %s2809_s20, %s123_s25  }
   0xb   : > { %p2910_p5 = por %p134_p2, %p133_p0  ;;  %p2914_p6 = por %p140_p4, %p139_p3 }
   0xc   : > { %p2327_p7 = scmp.ge.s32.totalorder %s2813_s21, 1  ;;  %p210_p8 = scmp.lt.s32.totalorder %s2813_s21, 3 }
   0xe   : > { %p211_p9 = pnand %p2327_p7, %p210_p8 }
   0xf   : > { %v310_v0 = vld [vmem:[%s3384_s2] sm:$0xff] (!%p211_p9)  ;;  %s2330_s7 = sshll.u32 (!%p211_p9), %s2893_s22, 1  ;;  %v274_v1 = vlaneseq (!%p211_p9)  ;;  %vm311_vm0 = vcmask (!%p211_p9), 64512   ;;  %vm289_vm2 = vcmask (!%p211_p9), 130048   ;;  %vm971_vm4 = vcmask (!%p211_p9), 31744   ;;  %s2815_s17 = smov (!%p211_p9), 108  }
  0x10   : > { %214 = sbr.rel (%p211_p9) target bundleno = 1204 (0x4b4), region = 36  ;;  %2436 = vmatprep.subr.mxu0 (!%p211_p9), %v310_v0  ;;  %p251_p10 = scmp.lt.s32.totalorder (!%p211_p9), %s2330_s7, 3  ;;  %v2344_v44 = vld [vmem:[%s3385_s3] ss:$0 sm:$0xff] (!%p211_p9)  ;;  %vm2981_vm5 = vmpackc.low (!%p211_p9), %vm971_vm4, %vm971_vm4  ;;  %vm926_vm6 = vcmask (!%p211_p9), 195584   ;;  %vm929_vm7 = vcmask (!%p211_p9), 261120  }
  0x11   : > { %2437 = vmatpush3.msra.mxu0 (!%p211_p9), %v310_v0  ;;  %v2925_v2 = vshrl.u32 (!%p211_p9), %v274_v1, 7  ;;  %v278_v3 = vand.u32 (!%p211_p9), 127, %v274_v1  ;;  %s2816_s23 = smov (!%p211_p9), 112   ;;  %s2817_s25 = smov (!%p211_p9), 124   ;;  %vm932_vm8 = vcmask (!%p211_p9), 326656   ;;  %vm935_vm9 = vcmask (!%p211_p9), 392192  }
  0x12   : > { %s2818_s26 = smov (!%p211_p9), 104   ;;  %s2819_s30 = smov (!%p211_p9), 100   ;;  %vm938_vm10 = vcmask (!%p211_p9), 457728   ;;  %vm941_vm11 = vcmask (!%p211_p9), 523264   ;;  %vm944_vm12 = vcmask (!%p211_p9), 588800   ;;  %vm947_vm13 = vcmask (!%p211_p9), 654336  }
  0x13   : > { %v276_v4 = vadd.s32 (!%p211_p9), 8, %v2925_v2  ;;  %vm279_vm1 = vcmp.eq.s32.totalorder (!%p211_p9), %v2925_v2, %v278_v3  ;;  %s2820_s6 = smov (!%p211_p9), 120   ;;  %s2826_s9 = smov (!%p211_p9), 64   ;;  %vm950_vm14 = vcmask (!%p211_p9), 719872   ;;  %vm953_vm15 = vcmask (!%p211_p9), 785408  }
  0x14   : > { %s2827_s10 = smov (!%p211_p9), 72   ;;  %s2829_s12 = smov (!%p211_p9), 88  }
  0x15   : > { %vm280_vm3 = vcmp.eq.s32.totalorder (!%p211_p9), %v276_v4, %v278_v3  ;;  %s2830_s13 = smov (!%p211_p9), 8   ;;  %s2832_s15 = smov (!%p211_p9), 32  }
  0x16   : > { %s2833_s16 = smov (!%p211_p9), 24  }
  0x17   : > { %s3399_s7 = smov (!%p251_p10, %s2330_s7), 3 }
  0x18   : > { %s2386_s8 = sshll.u32 %s3399_s7, 4  ;;  %s2821_s7 = smov 116  }
  0x19   : > { %s255_s11 = scalar_lea.vmem %s3382_s0, %s2386_s8  ;;  %s262_s14 = scalar_lea.vmem %s3383_s1, %s2386_s8 }
  0x1a   : > { %v266_v5 = vld [vmem:[%s255_s11] sm:$0xff]  ;;  %v267_v6 = vld [vmem:[%s255_s11 + $0x8] sm:$0xff]  ;;  %v268_v7 = vld [vmem:[%s255_s11 + $0x10] sm:$0xff]  ;;  %s2822_s8 = smov 96  }
  0x1b   : > { %2438 = vmatprep.mubr.msk.f32.mxu0 %vm311_vm0, %v266_v5  ;;  %v270_v8 = vld [vmem:[%s262_s14] sm:$0xff]  ;;  %v272_v9 = vld [vmem:[%s262_s14 + $0x10] sm:$0xff]  ;;  %v271_v12 = vld [vmem:[%s262_s14 + $0x8] sm:$0xff] }
  0x1c   : > { %2439 = vmatmul.mubr.msk.f32.vlgmr.msra.gmra.mrb[0].mxu0 %vm311_vm0, %v267_v6  ;;  %v285_v10 = vsel %vm279_vm1, 1.0, %v270_v8  ;;  %v287_v11 = vsel %vm279_vm1, 1.0, %v272_v9  ;;  %v273_v13 = vld [vmem:[%s262_s14 + $0x18] sm:$0xff]  ;;  %v286_v17 = vsel %vm280_vm3, 1.0, %v271_v12  ;;  %s2831_s14 = smov 16   ;;  %vm959_vm1 = vcmask 916480  }
  0x1d   : > { %2441 = vmatprep.mubr.msk.f32.mxu0 %vm311_vm0, %v268_v7  ;;  %v269_v14 = vld [vmem:[%s255_s11 + $0x18] sm:$0xff]  ;;  %v290_v15 = vsel %vm289_vm2, %v285_v10, 0.0  ;;  %v296_v16 = vsel %vm289_vm2, %v287_v11, 0.0  ;;  %v288_v18 = vsel %vm280_vm3, 1.0, %v273_v13  ;;  %2448 = vmatprep.mubr.msk.f32.mxu1 %vm289_vm2, %v285_v10  ;;  %v293_v19 = vsel %vm289_vm2, %v286_v17, 0.0  ;;  %s2828_s11 = smov 80  }
  0x1e   : > { %291 = vadd.xlane.f32.xlu0 %v290_v15  ;;  %297 = vadd.xlane.f32.xlu1 %v296_v16  ;;  %v299_v20 = vsel %vm289_vm2, %v288_v18, 0.0  ;;  %vm962_vm3 = vcmask 982016  }
  0x20   : > { %2442 = vmatmul.mubr.msk.f32.gmra.mrb[2].mxu0 %vm311_vm0, %v269_v14 }
  0x22   : > { %294 = vadd.xlane.f32.xlu0 %v293_v19  ;;  %300 = vadd.xlane.f32.xlu1 %v299_v20 }
  0xab   : > { %v292_v21 = vpop.xlane.xlu0 %291  ;;  %v298_v22 = vpop.xlane.xlu1 %297 }
  0xac   : > { %v302_v26 = vmax.f32 %v292_v21, 1.0  ;;  %v304_v28 = vmax.f32 %v298_v22, 1.0 }
  0xaf   : > { %v295_v23 = vpop.xlane.xlu0 %294  ;;  %v301_v25 = vpop.xlane.xlu1 %300 }
  0xb0   : > { %v303_v24 = vmax.f32 %v295_v23, 1.0  ;;  %v305_v27 = vmax.f32 %v301_v25, 1.0 }
  0xb2   : > { %2679 = vrsqrt.f32 %v303_v24 }
  0xb3   : > { %2681 = vrsqrt.f32 %v302_v26 }
  0xb4   : > { %2683 = vrsqrt.f32 %v305_v27 }
  0xb5   : > { %2685 = vrsqrt.f32 %v304_v28 }
  0xbc   : > { %v2680_v29 = vpop.eup %2679 }
  0xbd   : > { %v2682_v31 = vpop.eup %2681 }
  0xbe   : > { %v2684_v34 = vpop.eup %2683 }
  0xbf   : > { %v2686_v38 = vpop.eup %2685 }
  0xef   : > { %v2440_v30 = vpop.f32.mrb[0].mxu0 }
  0xf0   : > { %v410_v32 = vmul.f32 %v2680_v29, %v2440_v30  ;;  %v390_v33 = vpop.f32.mrb[1].mxu0 }
  0xf1   : > { %v409_v35 = vmul.f32 %v2682_v31, %v390_v33 }
  0xf3   : > { %v2443_v36 = vpop.f32.mrb[2].mxu0  ;;  %v2514_v37 = vpack.c.bf16 %v410_v32, %v409_v35 }
  0xf4   : > { %v412_v39 = vmul.f32 %v2684_v34, %v2443_v36  ;;  %v400_v40 = vpop.f32.mrb[3].mxu0 }
  0xf5   : > { %v411_v41 = vmul.f32 %v2686_v38, %v400_v40  ;;  %2515 = vmatprep.subr.bf16.mxu1 %v2514_v37 }
  0xf6   : > { %2517 = vmatpush3.bf16.msra.mxu1 %v2514_v37 }
  0xf7   : > { %v2518_v42 = vpack.c.bf16 %v412_v39, %v411_v41 }
  0xf9   : > { %2449 = vmatmul.mubr.msk.f32.vlgmr.msra.gmra.mrb[0].mxu1 %vm289_vm2, %v286_v17  ;;  %2519 = vmatprep.subr.bf16.mxu1 %v2518_v42 }
  0xfa   : > { %2521 = vmatpush3.bf16.msra.mxu1 %v2518_v42  ;;  %2455 = vmatprep.mubr.msk.f32.mxu1 %vm289_vm2, %v287_v11  ;;  %v2824_v42 = vmov 1934713408  }
  0xfd   : > { %2456 = vmatmul.mubr.msk.f32.vlgmr.msra.gmra.mrb[2].mxu1 %vm289_vm2, %v288_v18 }
 0x1cc   : > { %v2450_v43 = vpop.f32.mrb[0].mxu1 }
 0x1cd   : > { %v576_v45 = vmul.f32 %v2680_v29, %v2450_v43  ;;  %v485_v46 = vpop.f32.mrb[1].mxu1  ;;  %v623_v43 = vunpack.c.l.s4 %v2824_v42 }
 0x1ce   : > { %v575_v47 = vmul.f32 %v2682_v31, %v485_v46 }
 0x1cf   : > { %v2951_v48 = vadd.f32 %v2344_v44, %v576_v45  ;;  %v624_v46 = vunpack.c.0.s8 %v623_v43 }
 0x1d0   : > { %v586_v49 = vadd.f32 %v2344_v44, %v575_v47  ;;  %v2457_v50 = vpop.f32.mrb[2].mxu1 }
 0x1d1   : > { %v578_v51 = vmul.f32 %v2684_v34, %v2457_v50  ;;  %v566_v52 = vpop.f32.mrb[3].mxu1 }
 0x1d2   : > { %v577_v53 = vmul.f32 %v2686_v38, %v566_v52  ;;  %2462 = vmatprep.mubr.msk.f32.mxu0 %vm971_vm4, %v586_v49  ;;  %v2644_v54 = vpack.i.bf16 %v2951_v48, %v586_v49  ;;  %v2823_v38 = vmov 1983009808  }
 0x1d3   : > { %v2955_v55 = vadd.f32 %v2344_v44, %v578_v51  ;;  %v608_v39 = vunpack.c.l.s4 %v2823_v38  ;;  %v2825_v51 = vmov 0.0  }
 0x1d4   : > { %v588_v56 = vadd.f32 %v2344_v44, %v577_v53  ;;  %2645 = vrot.lane.b32.xlu1 %v2644_v54, %s2815_s17  ;;  %2640 = vrot.lane.b32.xlu0 %v2644_v54, %s2816_s23 }
 0x1d5   : > { %v609_v44 = vunpack.c.0.s8 %v608_v39 }
 0x1d6   : > { %2469 = vmatprep.mubr.msk.f32.mxu1 %vm971_vm4, %v588_v56  ;;  %v2654_v57 = vpack.i.bf16 %v2955_v55, %v588_v56 }
 0x1d7   : > { %v3034_v47 = vsub.s32 %v609_v44, %v2925_v2 }
 0x1d8   : > { %1152 = vrot.lane.b32.xlu0 %v2951_v48, %s2817_s25  ;;  %2655 = vrot.lane.b32.xlu1 %v2654_v57, %s2816_s23 }
 0x1dc   : > { %2650 = vrot.lane.b32.xlu0 %v2644_v54, %s2818_s26  ;;  %1243 = vrot.lane.b32.xlu1 %v2955_v55, %s2817_s25 }
 0x1e0   : > { %1150 = vrot.lane.b32.xlu0 %v586_v49, %s2817_s25  ;;  %2665 = vrot.lane.b32.xlu1 %v2654_v57, %s2815_s17  ;;  %s2834_s17 = smov 40  }
 0x1e4   : > { %2660 = vrot.lane.b32.xlu0 %v2644_v54, %s2819_s30  ;;  %1437 = vrot.lane.b32.xlu1 %v2955_v55, %s2820_s6 }
 0x1e8   : > { %1344 = vrot.lane.b32.xlu0 %v586_v49, %s2820_s6  ;;  %2670 = vrot.lane.b32.xlu1 %v2654_v57, %s2818_s26 }
 0x1ec   : > { %1346 = vrot.lane.b32.xlu0 %v2951_v48, %s2820_s6  ;;  %1241 = vrot.lane.b32.xlu1 %v588_v56, %s2817_s25  ;;  %s2835_s25 = smov 48  }
 0x1f0   : > { %1538 = vrot.lane.b32.xlu0 %v586_v49, %s2821_s7  ;;  %2675 = vrot.lane.b32.xlu1 %v2654_v57, %s2819_s30 }
 0x1f4   : > { %1540 = vrot.lane.b32.xlu0 %v2951_v48, %s2821_s7  ;;  %1435 = vrot.lane.b32.xlu1 %v588_v56, %s2820_s6 }
 0x1f8   : > { %594 = vrot.lane.b32.xlu0 %v586_v49, %s2822_s8  ;;  %1629 = vrot.lane.b32.xlu1 %v588_v56, %s2821_s7  ;;  %v3037_v49 = vsub.s32 %v624_v46, %v2925_v2 }
 0x1fc   : > { %598 = vrot.lane.b32.xlu0 %v588_v56, %s2822_s8  ;;  %1631 = vrot.lane.b32.xlu1 %v2955_v55, %s2821_s7  ;;  %s2390_s7 = sshll.u32 %s2893_s22, 6 }
 0x200   : > { %596 = vrot.lane.b32.xlu1 %v2951_v48, %s2822_s8 }
 0x204   : > { %600 = vrot.lane.b32.xlu1 %v2955_v55, %s2822_s8 }
 0x246   : > { %v2646_v58 = vpop.permute.xlu1 %2645  ;;  %v2641_v59 = vpop.permute.xlu0 %2640 }
 0x247   : > { %v2648_v60 = vunpack.i.h.bf16 %v2646_v58  ;;  %v2647_v61 = vunpack.i.l.bf16 %v2646_v58  ;;  %v2643_v62 = vunpack.i.h.bf16 %v2641_v59  ;;  %v2642_v63 = vunpack.i.l.bf16 %v2641_v59 }
 0x249   : > { %v2522_v3 = vpack.c.bf16 %v2643_v62, %v2642_v63  ;;  %v2534_v6 = vpack.c.bf16 %v2648_v60, %v2647_v61 }
 0x24a   : > { %v1153_v4 = vpop.permute.xlu0 %1152  ;;  %v2656_v5 = vpop.permute.xlu1 %2655 }
 0x24b   : > { %v2658_v7 = vunpack.i.h.bf16 %v2656_v5  ;;  %v2657_v8 = vunpack.i.l.bf16 %v2656_v5  ;;  %2524 = vmatprep.subr.msk.bf16.mxu0 %vm2981_vm5, %v2522_v3 }
 0x24c   : > { %2527 = vmatpush3.bf16.xpose.msk.msra.mxu0 %vm2981_vm5, %v2522_v3 }
 0x24d   : > { %v2528_v9 = vpack.c.bf16 %v2658_v7, %v2657_v8  ;;  %2536 = vmatprep.subr.msk.bf16.mxu0 %vm2981_vm5, %v2534_v6 }
 0x24e   : > { %v2651_v10 = vpop.permute.xlu0 %2650  ;;  %v1244_v11 = vpop.permute.xlu1 %1243 }
 0x24f   : > { %v2653_v12 = vunpack.i.h.bf16 %v2651_v10  ;;  %v2652_v13 = vunpack.i.l.bf16 %v2651_v10  ;;  %2530 = vmatprep.subr.msk.bf16.mxu1 %vm2981_vm5, %v2528_v9 }
 0x250   : > { %2533 = vmatpush3.bf16.xpose.msk.msra.mxu1 %vm2981_vm5, %v2528_v9 }
 0x251   : > { %v2546_v16 = vpack.c.bf16 %v2653_v12, %v2652_v13 }
 0x252   : > { %v1151_v14 = vpop.permute.xlu0 %1150  ;;  %v2666_v15 = vpop.permute.xlu1 %2665 }
 0x253   : > { %v2668_v17 = vunpack.i.h.bf16 %v2666_v15  ;;  %v2667_v18 = vunpack.i.l.bf16 %v2666_v15  ;;  %2463 = vmatmul.mubr.msk.f32.vlgmr.msra.gmra.mrb[4].mxu0 %vm971_vm4, %v2951_v48 }
 0x254   : > { %2539 = vmatpush3.bf16.xpose.msk.msra.mxu0 %vm2981_vm5, %v2534_v6  ;;  %2476 = vmatprep.mubr.msk.f32.mxu0 %vm971_vm4, %v1151_v14 }
 0x255   : > { %v2540_v19 = vpack.c.bf16 %v2668_v17, %v2667_v18  ;;  %2548 = vmatprep.subr.msk.bf16.mxu0 %vm2981_vm5, %v2546_v16 }
 0x256   : > { %v2661_v20 = vpop.permute.xlu0 %2660  ;;  %v1438_v21 = vpop.permute.xlu1 %1437 }
 0x257   : > { %v2663_v22 = vunpack.i.h.bf16 %v2661_v20  ;;  %v2662_v23 = vunpack.i.l.bf16 %v2661_v20  ;;  %2470 = vmatmul.mubr.msk.f32.vlgmr.msra.gmra.mrb[4].mxu1 %vm971_vm4, %v2955_v55  ;;  %2542 = vmatprep.subr.msk.bf16.mxu1 %vm2981_vm5, %v2540_v19 }
 0x258   : > { %2545 = vmatpush3.bf16.xpose.msk.msra.mxu1 %vm2981_vm5, %v2540_v19 }
 0x259   : > { %v2558_v26 = vpack.c.bf16 %v2663_v22, %v2662_v23 }
 0x25a   : > { %v1345_v24 = vpop.permute.xlu0 %1344  ;;  %v2671_v25 = vpop.permute.xlu1 %2670 }
 0x25b   : > { %v2673_v27 = vunpack.i.h.bf16 %v2671_v25  ;;  %v2672_v28 = vunpack.i.l.bf16 %v2671_v25  ;;  %2477 = vmatmul.mubr.msk.f32.vlgmr.msra.gmra.mrb[6].mxu0 %vm971_vm4, %v1153_v4 }
 0x25c   : > { %2551 = vmatpush3.bf16.xpose.msk.msra.mxu0 %vm2981_vm5, %v2546_v16  ;;  %2490 = vmatprep.mubr.msk.f32.mxu0 %vm971_vm4, %v1345_v24 }
 0x25d   : > { %v2552_v29 = vpack.c.bf16 %v2673_v27, %v2672_v28  ;;  %2560 = vmatprep.subr.msk.bf16.mxu0 %vm2981_vm5, %v2558_v26 }
 0x25e   : > { %v1347_v30 = vpop.permute.xlu0 %1346  ;;  %v1242_v31 = vpop.permute.xlu1 %1241 }
 0x25f   : > { %2483 = vmatprep.mubr.msk.f32.mxu1 %vm971_vm4, %v1242_v31  ;;  %2554 = vmatprep.subr.msk.bf16.mxu1 %vm2981_vm5, %v2552_v29 }
 0x260   : > { %2484 = vmatmul.mubr.msk.f32.vlgmr.msra.gmra.mrb[6].mxu1 %vm971_vm4, %v1244_v11 }
 0x261   : > { %2557 = vmatpush3.bf16.xpose.msk.msra.mxu1 %vm2981_vm5, %v2552_v29 }
 0x262   : > { %v1539_v32 = vpop.permute.xlu0 %1538  ;;  %v2676_v33 = vpop.permute.xlu1 %2675 }
 0x263   : > { %v2678_v34 = vunpack.i.h.bf16 %v2676_v33  ;;  %v2677_v35 = vunpack.i.l.bf16 %v2676_v33  ;;  %2491 = vmatmul.mubr.msk.f32.vlgmr.msra.gmra.mrb[8].mxu0 %vm971_vm4, %v1347_v30 }
 0x264   : > { %2563 = vmatpush3.bf16.xpose.msk.msra.mxu0 %vm2981_vm5, %v2558_v26  ;;  %2504 = vmatprep.mubr.msk.f32.mxu0 %vm971_vm4, %v1539_v32 }
 0x265   : > { %v2564_v36 = vpack.c.bf16 %v2678_v34, %v2677_v35 }
 0x266   : > { %v1436_v37 = vpop.permute.xlu1 %1435  ;;  %v1541_v40 = vpop.permute.xlu0 %1540 }
 0x267   : > { %2497 = vmatprep.mubr.msk.f32.mxu1 %vm971_vm4, %v1436_v37  ;;  %2566 = vmatprep.subr.msk.bf16.mxu1 %vm2981_vm5, %v2564_v36 }
 0x268   : > { %2498 = vmatmul.mubr.msk.f32.vlgmr.msra.gmra.mrb[8].mxu1 %vm971_vm4, %v1438_v21 }
 0x269   : > { %2569 = vmatpush3.bf16.xpose.msk.msra.mxu1 %vm2981_vm5, %v2564_v36 }
 0x26a   : > { %v1630_v41 = vpop.permute.xlu1 %1629  ;;  %v595_v56 = vpop.permute.xlu0 %594 }
 0x26b   : > { %2505 = vmatmul.mubr.msk.f32.vlgmr.msra.gmra.mrb[10].mxu0 %vm971_vm4, %v1541_v40  ;;  %2511 = vmatprep.mubr.msk.f32.mxu1 %vm971_vm4, %v1630_v41  ;;  %v613_v61 = vrot.slane %v595_v56, %v3034_v47  ;;  %v606_v9 = vcombine.high %v595_v56, %v2825_v51 }
 0x26d   : > { %v3058_v4 = vrot.slane %v613_v61, %v3037_v49  ;;  %v621_v10 = vcombine.high %v613_v61, %v2825_v51  ;;  %v620_v14 = vrot.slane %v606_v9, %v3034_v47 }
 0x26e   : > { %v1632_v45 = vpop.permute.xlu1 %1631  ;;  %v599_v3 = vpop.permute.xlu0 %598 }
 0x26f   : > { %v711_v5 = vrot.slane %v599_v3, %v3034_v47  ;;  %v651_v12 = vcombine.high %v3058_v4, %v2825_v51  ;;  %v704_v15 = vcombine.high %v599_v3, %v2825_v51  ;;  %v635_v17 = vrot.slane %v621_v10, %v3037_v49 }
 0x270   : > { %2512 = vmatmul.mubr.msk.f32.vlgmr.msra.gmra.mrb[10].mxu1 %vm971_vm4, %v1632_v45  ;;  %v643_v21 = vrot.slane %v620_v14, %v3037_v49  ;;  %v636_v28 = vcombine.high %v620_v14, %v2825_v51 }
 0x271   : > { %v3071_v11 = vrot.slane %v711_v5, %v3037_v49  ;;  %v719_v16 = vcombine.high %v711_v5, %v2825_v51  ;;  %v718_v19 = vrot.slane %v704_v15, %v3034_v47  ;;  %v652_v26 = vcombine.high %v635_v17, %v2825_v51 }
 0x272   : > { %v597_v48 = vpop.permute.xlu1 %596  ;;  %v653_v29 = vcombine.high %v643_v21, %v2825_v51  ;;  %v650_v31 = vrot.slane %v636_v28, %v3037_v49 }
 0x273   : > { %v662_v50 = vrot.slane %v597_v48, %v3034_v47  ;;  %v655_v57 = vcombine.high %v597_v48, %v2825_v51  ;;  %v749_v18 = vcombine.high %v3071_v11, %v2825_v51  ;;  %v733_v22 = vrot.slane %v719_v16, %v3037_v49 }
 0x274   : > { %v741_v25 = vrot.slane %v718_v19, %v3037_v49  ;;  %v734_v33 = vcombine.high %v718_v19, %v2825_v51  ;;  %v654_v35 = vcombine.high %v650_v31, %v2825_v51 }
 0x275   : > { %v670_v52 = vcombine.high %v662_v50, %v2825_v51  ;;  %v677_v53 = vrot.slane %v662_v50, %v3037_v49  ;;  %v3051_v62 = vrot.slane %v655_v57, %v3034_v47  ;;  %v750_v32 = vcombine.high %v733_v22, %v2825_v51 }
 0x276   : > { %v601_v54 = vpop.permute.xlu1 %600  ;;  %v751_v34 = vcombine.high %v741_v25, %v2825_v51  ;;  %v748_v36 = vrot.slane %v734_v33, %v3037_v49 }
 0x277   : > { %v760_v55 = vrot.slane %v601_v54, %v3034_v47  ;;  %860 = vrot.lane.b32.xlu0 %v677_v53, %s2826_s9  ;;  %v700_v59 = vcombine.high %v677_v53, %v2825_v51  ;;  %v684_v60 = vrot.slane %v670_v52, %v3037_v49  ;;  %v753_v63 = vcombine.high %v601_v54, %v2825_v51 }
 0x278   : > { %v692_v7 = vrot.slane %v3051_v62, %v3037_v49  ;;  %v752_v37 = vcombine.high %v748_v36, %v2825_v51 }
 0x279   : > { %v775_v58 = vrot.slane %v760_v55, %v3037_v49  ;;  %v701_v0 = vcombine.high %v684_v60, %v2825_v51  ;;  %v3062_v6 = vrot.slane %v753_v63, %v3034_v47  ;;  %v768_v20 = vcombine.high %v760_v55, %v2825_v51 }
 0x27a   : > { %v702_v24 = vcombine.high %v692_v7, %v2825_v51 }
 0x27b   : > { %868 = vrot.lane.b32.xlu0 %v700_v59, %s2827_s10  ;;  %862 = vrot.lane.b32.xlu1 %v775_v58, %s2826_s9  ;;  %v798_v8 = vcombine.high %v775_v58, %v2825_v51  ;;  %v790_v13 = vrot.slane %v3062_v6, %v3037_v49  ;;  %v782_v23 = vrot.slane %v768_v20, %v3037_v49 }
 0x27d   : > { %v799_v27 = vcombine.high %v782_v23, %v2825_v51  ;;  %v800_v30 = vcombine.high %v790_v13, %v2825_v51 }
 0x27f   : > { %876 = vrot.lane.b32.xlu0 %v684_v60, %s2828_s11  ;;  %884 = vrot.lane.b32.xlu1 %v701_v0, %s2829_s12 }
 0x283   : > { %892 = vrot.lane.b32.xlu0 %v692_v7, %s2822_s8  ;;  %870 = vrot.lane.b32.xlu1 %v798_v8, %s2827_s10 }
 0x287   : > { %804 = vrot.lane.b32.xlu0 %v651_v12, %s2830_s13  ;;  %894 = vrot.lane.b32.xlu1 %v790_v13, %s2822_s8 }
 0x28b   : > { %812 = vrot.lane.b32.xlu0 %v635_v17, %s2831_s14  ;;  %806 = vrot.lane.b32.xlu1 %v749_v18, %s2830_s13 }
 0x28f   : > { %828 = vrot.lane.b32.xlu0 %v643_v21, %s2832_s15  ;;  %814 = vrot.lane.b32.xlu1 %v733_v22, %s2831_s14 }
 0x293   : > { %900 = vrot.lane.b32.xlu0 %v702_v24, %s2818_s26  ;;  %830 = vrot.lane.b32.xlu1 %v741_v25, %s2832_s15 }
 0x297   : > { %820 = vrot.lane.b32.xlu0 %v652_v26, %s2833_s16  ;;  %886 = vrot.lane.b32.xlu1 %v799_v27, %s2829_s12  ;;  %s2388_s12 = sshll.u32 %s2893_s22, 5 }
 0x29b   : > { %836 = vrot.lane.b32.xlu0 %v653_v29, %s2834_s17  ;;  %902 = vrot.lane.b32.xlu1 %v800_v30, %s2818_s26  ;;  %s2836_s26 = smov 56  }
 0x29f   : > { %844 = vrot.lane.b32.xlu0 %v650_v31, %s2835_s25  ;;  %822 = vrot.lane.b32.xlu1 %v750_v32, %s2833_s16 }
 0x2a3   : > { %878 = vrot.lane.b32.xlu0 %v782_v23, %s2828_s11  ;;  %838 = vrot.lane.b32.xlu1 %v751_v34, %s2834_s17  ;;  %s3296_s17 = scalar_lea.hbm %s3387_s5, %s2390_s7  ;;  %s2838_s7 = smov [#allocation4]  }
 0x2a4   : > { %s2723_s13 = sshll.u32 %s2838_s7, 4  ;;  %s2724_s13 = int_to_ptr.vmem [resolvable:$false] %s2723_s13 }
 0x2a5   : > { %s2725_s16 = scalar_lea.vmem %s2724_s13, 128 }
 0x2a7   : > { %852 = vrot.lane.b32.xlu0 %v654_v35, %s2836_s26  ;;  %846 = vrot.lane.b32.xlu1 %v748_v36, %s2835_s25 }
 0x2ab   : > { %854 = vrot.lane.b32.xlu1 %v752_v37, %s2836_s26  ;;  %s3309_s26 = scalar_lea.hbm %s3386_s4, %s2388_s12 }
 0x2e9   : > { %v861_v38 = vpop.permute.xlu0 %860 }
 0x2ed   : > { %v869_v39 = vpop.permute.xlu0 %868  ;;  %v863_v40 = vpop.permute.xlu1 %862 }
 0x2f1   : > { %v877_v41 = vpop.permute.xlu0 %876  ;;  %v885_v42 = vpop.permute.xlu1 %884 }
 0x2f5   : > { %v893_v43 = vpop.permute.xlu0 %892  ;;  %v871_v44 = vpop.permute.xlu1 %870 }
 0x2f9   : > { %v805_v45 = vpop.permute.xlu0 %804  ;;  %v895_v46 = vpop.permute.xlu1 %894 }
 0x2fa   : > { %v922_v48 = vsel %vm311_vm0, %v3058_v4, %v805_v45 }
 0x2fd   : > { %v813_v50 = vpop.permute.xlu0 %812  ;;  %v807_v52 = vpop.permute.xlu1 %806 }
 0x2fe   : > { %v924_v53 = vsel %vm289_vm2, %v922_v48, %v813_v50  ;;  %v923_v54 = vsel %vm311_vm0, %v3071_v11, %v807_v52  ;;  %vm956_vm0 = vcmask 850944  }
 0x301   : > { %v829_v55 = vpop.permute.xlu0 %828  ;;  %v815_v56 = vpop.permute.xlu1 %814 }
 0x302   : > { %v925_v57 = vsel %vm289_vm2, %v923_v54, %v815_v56 }
 0x305   : > { %v901_v58 = vpop.permute.xlu0 %900  ;;  %v831_v59 = vpop.permute.xlu1 %830 }
 0x309   : > { %v821_v60 = vpop.permute.xlu0 %820  ;;  %v887_v61 = vpop.permute.xlu1 %886 }
 0x30a   : > { %v927_v63 = vsel %vm926_vm6, %v924_v53, %v821_v60 }
 0x30b   : > { %v930_v0 = vsel %vm929_vm7, %v927_v63, %v829_v55 }
 0x30d   : > { %v837_v3 = vpop.permute.xlu0 %836  ;;  %v903_v4 = vpop.permute.xlu1 %902 }
 0x30e   : > { %v933_v5 = vsel %vm932_vm8, %v930_v0, %v837_v3 }
 0x311   : > { %v845_v7 = vpop.permute.xlu0 %844  ;;  %v823_v8 = vpop.permute.xlu1 %822 }
 0x312   : > { %v936_v9 = vsel %vm935_vm9, %v933_v5, %v845_v7  ;;  %v928_v10 = vsel %vm926_vm6, %v925_v57, %v823_v8 }
 0x313   : > { %v931_v11 = vsel %vm929_vm7, %v928_v10, %v831_v59 }
 0x315   : > { %v879_v12 = vpop.permute.xlu0 %878  ;;  %v839_v13 = vpop.permute.xlu1 %838 }
 0x316   : > { %v934_v14 = vsel %vm932_vm8, %v931_v11, %v839_v13 }
 0x319   : > { %v853_v15 = vpop.permute.xlu0 %852  ;;  %v847_v16 = vpop.permute.xlu1 %846 }
 0x31a   : > { %v939_v17 = vsel %vm938_vm10, %v936_v9, %v853_v15  ;;  %v937_v18 = vsel %vm935_vm9, %v934_v14, %v847_v16 }
 0x31b   : > { %v942_v19 = vsel %vm941_vm11, %v939_v17, %v861_v38 }
 0x31c   : > { %v945_v20 = vsel %vm944_vm12, %v942_v19, %v869_v39 }
 0x31d   : > { %v948_v21 = vsel %vm947_vm13, %v945_v20, %v877_v41  ;;  %v855_v22 = vpop.permute.xlu1 %854 }
 0x31e   : > { %v940_v23 = vsel %vm938_vm10, %v937_v18, %v855_v22  ;;  %v951_v24 = vsel %vm950_vm14, %v948_v21, %v885_v42 }
 0x31f   : > { %v943_v25 = vsel %vm941_vm11, %v940_v23, %v863_v40  ;;  %v954_v26 = vsel %vm953_vm15, %v951_v24, %v893_v43 }
 0x320   : > { %v946_v27 = vsel %vm944_vm12, %v943_v25, %v871_v44  ;;  %v3129_v28 = vsel %vm956_vm0, %v954_v26, %v901_v58 }
 0x321   : > { %v949_v29 = vsel %vm947_vm13, %v946_v27, %v879_v12 }
 0x322   : > { %v952_v30 = vsel %vm950_vm14, %v949_v29, %v887_v61 }
 0x323   : > { %v955_v31 = vsel %vm953_vm15, %v952_v30, %v895_v46 }
 0x324   : > { %v3133_v32 = vsel %vm956_vm0, %v955_v31, %v903_v4 }
 0x326   : > { %v2464_v33 = vpop.f32.mrb[4].mxu0 }
 0x327   : > { %v1046_v34 = vpop.f32.mrb[5].mxu0  ;;  %v1143_v36 = vmul.f32 0.35355338, %v2464_v33 }
 0x328   : > { %v1142_v38 = vmul.f32 0.35355338, %v1046_v34 }
 0x329   : > { %2687 = vtanh.f32 %v1143_v36 }
 0x32a   : > { %v2471_v35 = vpop.f32.mrb[4].mxu1  ;;  %2689 = vtanh.f32 %v1142_v38 }
 0x32b   : > { %v1133_v37 = vpop.f32.mrb[5].mxu1  ;;  %v1145_v42 = vmul.f32 0.35355338, %v2471_v35 }
 0x32c   : > { %v1144_v44 = vmul.f32 0.35355338, %v1133_v37 }
 0x32e   : > { %v2478_v39 = vpop.f32.mrb[6].mxu0 }
 0x32f   : > { %v1333_v40 = vmul.f32 0.35355338, %v2478_v39  ;;  %v1232_v41 = vpop.f32.mrb[7].mxu0 }
 0x330   : > { %v1332_v43 = vmul.f32 0.35355338, %v1232_v41 }
 0x331   : > { %2691 = vtanh.f32 %v1333_v40 }
 0x332   : > { %2693 = vtanh.f32 %v1332_v43 }
 0x333   : > { %v2485_v45 = vpop.f32.mrb[6].mxu1  ;;  %2695 = vtanh.f32 %v1145_v42  ;;  %v2688_v56 = vpop.eup %2687 }
 0x334   : > { %v1335_v46 = vmul.f32 0.35355338, %v2485_v45  ;;  %v1323_v48 = vpop.f32.mrb[7].mxu1  ;;  %2697 = vtanh.f32 %v1144_v44  ;;  %v2690_v57 = vpop.eup %2689 }
 0x335   : > { %v1334_v50 = vmul.f32 0.35355338, %v1323_v48 }
 0x336   : > { %2699 = vtanh.f32 %v1335_v46  ;;  %v2492_v52 = vpop.f32.mrb[8].mxu0 }
 0x337   : > { %2701 = vtanh.f32 %v1334_v50  ;;  %v1527_v53 = vmul.f32 0.35355338, %v2492_v52  ;;  %v1426_v54 = vpop.f32.mrb[9].mxu0 }
 0x338   : > { %v1526_v55 = vmul.f32 0.35355338, %v1426_v54 }
 0x339   : > { %2703 = vtanh.f32 %v1527_v53 }
 0x33a   : > { %2705 = vtanh.f32 %v1526_v55 }
 0x33b   : > { %v2692_v58 = vpop.eup %2691  ;;  %v2499_v59 = vpop.f32.mrb[8].mxu1 }
 0x33c   : > { %v2694_v60 = vpop.eup %2693  ;;  %v1529_v61 = vmul.f32 0.35355338, %v2499_v59  ;;  %v1517_v63 = vpop.f32.mrb[9].mxu1  ;;  %v1341_v0 = vadd.f32 %v2692_v58, %v2688_v56 }
 0x33d   : > { %v1528_v3 = vmul.f32 0.35355338, %v1517_v63  ;;  %v1340_v4 = vadd.f32 %v2694_v60, %v2690_v57  ;;  %v2696_v5 = vpop.eup %2695 }
 0x33e   : > { %2707 = vtanh.f32 %v1529_v61  ;;  %v2506_v7 = vpop.f32.mrb[10].mxu0  ;;  %v2698_v8 = vpop.eup %2697 }
 0x33f   : > { %2709 = vtanh.f32 %v1528_v3  ;;  %v1721_v9 = vmul.f32 0.35355338, %v2506_v7  ;;  %v1620_v10 = vpop.f32.mrb[11].mxu0 }
 0x340   : > { %v2700_v11 = vpop.eup %2699  ;;  %v1720_v12 = vmul.f32 0.35355338, %v1620_v10 }
 0x341   : > { %v2702_v13 = vpop.eup %2701  ;;  %2711 = vtanh.f32 %v1721_v9  ;;  %v1343_v14 = vadd.f32 %v2700_v11, %v2696_v5 }
 0x342   : > { %2713 = vtanh.f32 %v1720_v12  ;;  %v1342_v15 = vadd.f32 %v2702_v13, %v2698_v8 }
 0x343   : > { %v2704_v16 = vpop.eup %2703  ;;  %v2513_v17 = vpop.f32.mrb[10].mxu1 }
 0x344   : > { %v2706_v18 = vpop.eup %2705  ;;  %v1723_v19 = vmul.f32 0.35355338, %v2513_v17  ;;  %v1711_v20 = vpop.f32.mrb[11].mxu1  ;;  %v1535_v21 = vadd.f32 %v2704_v16, %v1341_v0 }
 0x345   : > { %v1722_v22 = vmul.f32 0.35355338, %v1711_v20  ;;  %v1534_v23 = vadd.f32 %v2706_v18, %v1340_v4 }
 0x346   : > { %2715 = vtanh.f32 %v1723_v19 }
 0x347   : > { %2717 = vtanh.f32 %v1722_v22 }
 0x348   : > { %v2708_v24 = vpop.eup %2707 }
 0x349   : > { %v2710_v25 = vpop.eup %2709  ;;  %v1537_v26 = vadd.f32 %v2708_v24, %v1343_v14 }
 0x34a   : > { %v1536_v27 = vadd.f32 %v2710_v25, %v1342_v15 }
 0x34b   : > { %v2712_v29 = vpop.eup %2711 }
 0x34c   : > { %v2714_v30 = vpop.eup %2713  ;;  %v1729_v31 = vadd.f32 %v2712_v29, %v1535_v21 }
 0x34d   : > { %v1728_v33 = vadd.f32 %v2714_v30, %v1534_v23 }
 0x34f   : > { %1732 = vxpose.xlu1.b32.start [1/2] (short) (narrow) %v1728_v33, 16 }
 0x350   : > { %v2716_v34 = vpop.eup %2715 }
 0x351   : > { %v2718_v35 = vpop.eup %2717  ;;  %v1731_v36 = vadd.f32 %v2716_v34, %v1537_v26 }
 0x352   : > { %v1730_v37 = vadd.f32 %v2718_v35, %v1536_v27 }
 0x353   : > { %1733 = vxpose.xlu1.b32.end [2/2] (short) (narrow) %v1729_v31, 16 }
 0x354   : > { %1764 = vxpose.xlu0.b32.start [1/2] (short) (narrow) %v1730_v37, 16 }
 0x358   : > { %1765 = vxpose.xlu0.b32.end [2/2] (short) (narrow) %v1731_v36, 16 }
 0x3cf   : > { %v1748_v38 = vpop.trf.xlu1 }
 0x3d0   : > { %v1796_v39 = vadd.f32 %v1748_v38, %v1728_v33 }
 0x3d2   : > { %v1800_v40 = vmul.f32 0.125, %v1796_v39 }
 0x3d3   : > { %v1749_v56 = vpop.trf.xlu1 }
 0x3d4   : > { %v1811_v41 = vrot.slane %v1800_v40, %v3034_v47  ;;  %v1780_v42 = vpop.trf.xlu0  ;;  %v1804_v46 = vcombine.high %v1800_v40, %v2825_v51  ;;  %v1797_v60 = vadd.f32 %v1749_v56, %v1729_v31 }
 0x3d5   : > { %v1798_v43 = vadd.f32 %v1780_v42, %v1730_v37 }
 0x3d6   : > { %v3137_v44 = vrot.slane %v1811_v41, %v3037_v49  ;;  %v1819_v48 = vcombine.high %v1811_v41, %v2825_v51  ;;  %v1818_v54 = vrot.slane %v1804_v46, %v3034_v47  ;;  %v1801_v4 = vmul.f32 0.125, %v1797_v60 }
 0x3d7   : > { %v1802_v45 = vmul.f32 0.125, %v1798_v43  ;;  %v685_v43 = vcombine.high %v3051_v62, %v2825_v51 }
 0x3d8   : > { %v1849_v50 = vcombine.high %v3137_v44, %v2825_v51  ;;  %v1833_v55 = vrot.slane %v1819_v48, %v3037_v49  ;;  %v1841_v61 = vrot.slane %v1818_v54, %v3037_v49  ;;  %v1781_v3 = vpop.trf.xlu0  ;;  %v1860_v9 = vrot.slane %v1801_v4, %v3034_v47 }
 0x3d9   : > { %v1909_v52 = vrot.slane %v1802_v45, %v3034_v47  ;;  %v1902_v57 = vcombine.high %v1802_v45, %v2825_v51  ;;  %v1799_v7 = vadd.f32 %v1781_v3, %v1731_v36  ;;  %v1834_v11 = vcombine.high %v1818_v54, %v2825_v51 }
 0x3da   : > { %2002 = vrot.lane.b32.xlu0 %v1849_v50, %s2831_s14  ;;  %v1850_v5 = vcombine.high %v1833_v55, %v2825_v51  ;;  %v1851_v10 = vcombine.high %v1841_v61, %v2825_v51  ;;  %v3172_v14 = vrot.slane %v1860_v9, %v3037_v49  ;;  %v1853_v19 = vcombine.high %v1801_v4, %v2825_v51 }
 0x3db   : > { %v3146_v53 = vrot.slane %v1909_v52, %v3037_v49  ;;  %v1917_v58 = vcombine.high %v1909_v52, %v2825_v51  ;;  %v1916_v63 = vrot.slane %v1902_v57, %v3034_v47  ;;  %v1803_v12 = vmul.f32 0.125, %v1799_v7 }
 0x3dc   : > { %v1848_v15 = vrot.slane %v1834_v11, %v3037_v49  ;;  %v1868_v20 = vcombine.high %v1860_v9, %v2825_v51  ;;  %v1898_v21 = vcombine.high %v3172_v14, %v2825_v51  ;;  %v1867_v24 = vrot.slane %v1853_v19, %v3034_v47 }
 0x3dd   : > { %v1947_v59 = vcombine.high %v3146_v53, %v2825_v51  ;;  %v1931_v0 = vrot.slane %v1917_v58, %v3037_v49  ;;  %v1939_v8 = vrot.slane %v1916_v63, %v3037_v49  ;;  %v1958_v16 = vrot.slane %v1803_v12, %v3034_v47 }
 0x3de   : > { %2010 = vrot.lane.b32.xlu0 %v1833_v55, %s2832_s15  ;;  %v1932_v18 = vcombine.high %v1916_v63, %v2825_v51  ;;  %v1882_v25 = vrot.slane %v1868_v20, %v3037_v49  ;;  %v1951_v26 = vcombine.high %v1803_v12, %v2825_v51  ;;  %v1890_v30 = vrot.slane %v1867_v24, %v3037_v49 }
 0x3df   : > { %2004 = vrot.lane.b32.xlu1 %v1947_v59, %s2831_s14  ;;  %v1948_v13 = vcombine.high %v1931_v0, %v2825_v51  ;;  %v1949_v17 = vcombine.high %v1939_v8, %v2825_v51  ;;  %v3185_v22 = vrot.slane %v1958_v16, %v3037_v49  ;;  %v1966_v27 = vcombine.high %v1958_v16, %v2825_v51 }
 0x3e0   : > { %v1946_v23 = vrot.slane %v1932_v18, %v3037_v49  ;;  %v1965_v31 = vrot.slane %v1951_v26, %v3034_v47  ;;  %v1852_v34 = vcombine.high %v1848_v15, %v2825_v51  ;;  %v1899_v36 = vcombine.high %v1882_v25, %v2825_v51 }
 0x3e1   : > { %v1996_v29 = vcombine.high %v3185_v22, %v2825_v51  ;;  %v1980_v33 = vrot.slane %v1966_v27, %v3037_v49  ;;  %v1900_v47 = vcombine.high %v1890_v30, %v2825_v51  ;;  %v1883_v38 = vcombine.high %v1867_v24, %v2825_v51 }
 0x3e2   : > { %2026 = vrot.lane.b32.xlu0 %v1841_v61, %s2826_s9  ;;  %v1988_v35 = vrot.slane %v1965_v31, %v3037_v49  ;;  %v1950_v37 = vcombine.high %v1946_v23, %v2825_v51  ;;  %v1981_v42 = vcombine.high %v1965_v31, %v2825_v51  ;;  %v699_v48 = vrot.slane %v685_v43, %v3037_v49 }
 0x3e3   : > { %2012 = vrot.lane.b32.xlu1 %v1931_v0, %s2832_s15  ;;  %v1997_v39 = vcombine.high %v1980_v33, %v2825_v51  ;;  %v1897_v40 = vrot.slane %v1883_v38, %v3037_v49  ;;  %v783_v50 = vcombine.high %v3062_v6, %v2825_v51 }
 0x3e4   : > { %v1998_v41 = vcombine.high %v1988_v35, %v2825_v51  ;;  %v1995_v46 = vrot.slane %v1981_v42, %v3037_v49  ;;  %v703_v62 = vcombine.high %v699_v48, %v2825_v51 }
 0x3e5   : > { %v1901_v45 = vcombine.high %v1897_v40, %v2825_v51  ;;  %v797_v54 = vrot.slane %v783_v50, %v3037_v49 }
 0x3e6   : > { %2018 = vrot.lane.b32.xlu0 %v1850_v5, %s2835_s25  ;;  %v1999_v52 = vcombine.high %v1995_v46, %v2825_v51 }
 0x3e7   : > { %2028 = vrot.lane.b32.xlu1 %v1939_v8, %s2826_s9  ;;  %v801_v55 = vcombine.high %v797_v54, %v2825_v51 }
 0x3ea   : > { %2034 = vrot.lane.b32.xlu0 %v1851_v10, %s2828_s11 }
 0x3eb   : > { %2020 = vrot.lane.b32.xlu1 %v1948_v13, %s2835_s25 }
 0x3ee   : > { %2042 = vrot.lane.b32.xlu0 %v1848_v15, %s2822_s8  ;;  %v2837_v15 = vmov 1966171168  }
 0x3ef   : > { %2036 = vrot.lane.b32.xlu1 %v1949_v17, %s2828_s11  ;;  %v2146_v16 = vunpack.c.l.s4 %v2837_v15 }
 0x3f2   : > { %2058 = vrot.lane.b32.xlu0 %v1898_v21, %s2831_s14  ;;  %v2147_v21 = vunpack.c.0.s8 %v2146_v16 }
 0x3f3   : > { %2044 = vrot.lane.b32.xlu1 %v1946_v23, %s2822_s8 }
 0x3f6   : > { %2066 = vrot.lane.b32.xlu0 %v1882_v25, %s2832_s15 }
 0x3f7   : > { %2060 = vrot.lane.b32.xlu1 %v1996_v29, %s2831_s14 }
 0x3fa   : > { %2082 = vrot.lane.b32.xlu0 %v1890_v30, %s2826_s9  ;;  %v2150_v30 = vsub.s32 %v2147_v21, %v2925_v2 }
 0x3fb   : > { %2068 = vrot.lane.b32.xlu1 %v1980_v33, %s2832_s15 }
 0x3fe   : > { %2050 = vrot.lane.b32.xlu0 %v1852_v34, %s2816_s23 }
 0x3ff   : > { %2084 = vrot.lane.b32.xlu1 %v1988_v35, %s2826_s9 }
 0x402   : > { %2074 = vrot.lane.b32.xlu0 %v1899_v36, %s2835_s25 }
 0x403   : > { %2052 = vrot.lane.b32.xlu1 %v1950_v37, %s2816_s23 }
 0x406   : > { %2090 = vrot.lane.b32.xlu0 %v1900_v47, %s2828_s11 }
 0x407   : > { %2076 = vrot.lane.b32.xlu1 %v1997_v39, %s2835_s25 }
 0x40a   : > { %2098 = vrot.lane.b32.xlu0 %v1897_v40, %s2822_s8 }
 0x40b   : > { %2092 = vrot.lane.b32.xlu1 %v1998_v41, %s2828_s11 }
 0x40e   : > { %2106 = vrot.lane.b32.xlu0 %v1901_v45, %s2816_s23 }
 0x40f   : > { %2100 = vrot.lane.b32.xlu1 %v1995_v46, %s2822_s8 }
 0x412   : > { %908 = vrot.lane.b32.xlu0 %v699_v48, %s2816_s23 }
 0x413   : > { %2108 = vrot.lane.b32.xlu1 %v1999_v52, %s2816_s23 }
 0x416   : > { %916 = vrot.lane.b32.xlu0 %v703_v62, %s2820_s6 }
 0x417   : > { %910 = vrot.lane.b32.xlu1 %v797_v54, %s2816_s23  ;;  %s3259_s23 = sand.u32 1, %s2805_s19  }
 0x418   : > { %s2329_s30 = sshll.u32 %s3259_s23, 2 }
 0x419   : > { %s249_s8 = scalar_lea.vmem [#allocation4], %s2329_s30  ;;  %s2188_s30 = scalar_lea.sflag [#allocation5], %s3259_s23 }
 0x41a   : > { %s2218_s9 = sshll.u32 %s249_s8, 4  ;;  %s3298_s9 = int_to_ptr.vmem [resolvable:$true] %s2218_s9 }
 0x41b   : > { %918 = vrot.lane.b32.xlu1 %v801_v55, %s2820_s6  ;;  %s2328_s6 = sshll.u32 %s3259_s23, 1  ;;  %p2726_p0 = scmp.lt.s32.totalorder %s3298_s9, %s2724_s13 }
 0x41c   : > { %s3288_s10 = scalar_lea.vmem [#allocation2], %s2328_s6  ;;  %s2719_s6 = scalar_lea.vmem %s3298_s9, 64 }
 0x41d   : > { %s2201_s11 = sshll.u32 %s3288_s10, 4  ;;  %p2720_p11 = scmp.ne.s32.totalorder %s3298_s9, %s2719_s6  ;;  %s3300_s11 = int_to_ptr.vmem [resolvable:$true] %s2201_s11 }
 0x41e   : > { %p2727_p1 = scmp.lt.s32.totalorder %s2725_s16, %s2719_s6 }
 0x41f   : > { %p2721_p12 = pnand %p2720_p11, %p2910_p5 }
 0x420   : > { %p2728_p2 = por %p2727_p1, %p2726_p0 }
 0x421   : > { %p2722_p13 = pneg %p2721_p12 }
 0x423   : > { %p2729_p3 = pnand %p2728_p2, %p2722_p13 }
 0x44c   : > { %v2003_v56 = vpop.permute.xlu0 %2002 }
 0x44d   : > { %v2112_v18 = vsel %vm289_vm2, %v3137_v44, %v2003_v56 }
 0x450   : > { %v2011_v6 = vpop.permute.xlu0 %2010 }
 0x451   : > { %v2005_v57 = vpop.permute.xlu1 %2004  ;;  %v2114_v23 = vsel %vm929_vm7, %v2112_v18, %v2011_v6 }
 0x452   : > { %v2113_v44 = vsel %vm289_vm2, %v3146_v53, %v2005_v57 }
 0x454   : > { %v2027_v58 = vpop.permute.xlu0 %2026 }
 0x455   : > { %v2013_v59 = vpop.permute.xlu1 %2012 }
 0x456   : > { %v2115_v34 = vsel %vm929_vm7, %v2113_v44, %v2013_v59 }
 0x458   : > { %v2019_v60 = vpop.permute.xlu0 %2018 }
 0x459   : > { %v2029_v61 = vpop.permute.xlu1 %2028  ;;  %v2116_v25 = vsel %vm935_vm9, %v2114_v23, %v2019_v60 }
 0x45c   : > { %v2035_v63 = vpop.permute.xlu0 %2034 }
 0x45d   : > { %v2021_v0 = vpop.permute.xlu1 %2020 }
 0x45e   : > { %v2117_v2 = vsel %vm935_vm9, %v2115_v34, %v2021_v0 }
 0x45f   : > { %v2119_v43 = vsel %vm941_vm11, %v2117_v2, %v2029_v61 }
 0x460   : > { %v2043_v3 = vpop.permute.xlu0 %2042 }
 0x461   : > { %v2037_v4 = vpop.permute.xlu1 %2036 }
 0x462   : > { %v2121_v46 = vsel %vm947_vm13, %v2119_v43, %v2037_v4 }
 0x464   : > { %v2059_v49 = vpop.permute.xlu0 %2058 }
 0x465   : > { %v2045_v5 = vpop.permute.xlu1 %2044  ;;  %v2126_v19 = vsel %vm289_vm2, %v3172_v14, %v2059_v49  ;;  %v2118_v14 = vsel %vm941_vm11, %v2116_v25, %v2027_v58 }
 0x466   : > { %v2120_v35 = vsel %vm947_vm13, %v2118_v14, %v2035_v63  ;;  %v2123_v54 = vsel %vm953_vm15, %v2121_v46, %v2045_v5 }
 0x467   : > { %v2122_v53 = vsel %vm953_vm15, %v2120_v35, %v2043_v3 }
 0x468   : > { %v2067_v7 = vpop.permute.xlu0 %2066 }
 0x469   : > { %v2061_v8 = vpop.permute.xlu1 %2060  ;;  %v2128_v24 = vsel %vm929_vm7, %v2126_v19, %v2067_v7 }
 0x46a   : > { %v2127_v31 = vsel %vm289_vm2, %v3185_v22, %v2061_v8  ;;  %vm3274_vm2 = vcmp.lt.s32.totalorder %v274_v1, 256 }
 0x46c   : > { %v2083_v9 = vpop.permute.xlu0 %2082 }
 0x46d   : > { %v2069_v10 = vpop.permute.xlu1 %2068 }
 0x46e   : > { %v2129_v36 = vsel %vm929_vm7, %v2127_v31, %v2069_v10 }
 0x470   : > { %v2051_v51 = vpop.permute.xlu0 %2050 }
 0x471   : > { %v2085_v11 = vpop.permute.xlu1 %2084  ;;  %v2124_v39 = vsel %vm959_vm1, %v2122_v53, %v2051_v51 }
 0x474   : > { %v2075_v12 = vpop.permute.xlu0 %2074 }
 0x475   : > { %v2053_v13 = vpop.permute.xlu1 %2052  ;;  %v2130_v26 = vsel %vm935_vm9, %v2128_v24, %v2075_v12 }
 0x476   : > { %v2132_v33 = vsel %vm941_vm11, %v2130_v26, %v2083_v9  ;;  %v2125_v6 = vsel %vm959_vm1, %v2123_v54, %v2053_v13 }
 0x478   : > { %v2091_v17 = vpop.permute.xlu0 %2090 }
 0x479   : > { %v2077_v20 = vpop.permute.xlu1 %2076  ;;  %v2134_v37 = vsel %vm947_vm13, %v2132_v33, %v2091_v17 }
 0x47a   : > { %v2131_v22 = vsel %vm935_vm9, %v2129_v36, %v2077_v20 }
 0x47b   : > { %v2133_v45 = vsel %vm941_vm11, %v2131_v22, %v2085_v11 }
 0x47c   : > { %v2099_v27 = vpop.permute.xlu0 %2098 }
 0x47d   : > { %v2093_v29 = vpop.permute.xlu1 %2092  ;;  %v2136_v47 = vsel %vm953_vm15, %v2134_v37, %v2099_v27 }
 0x47e   : > { %v2135_v48 = vsel %vm947_vm13, %v2133_v45, %v2093_v29 }
 0x480   : > { %v2107_v38 = vpop.permute.xlu0 %2106 }
 0x481   : > { %v2101_v40 = vpop.permute.xlu1 %2100  ;;  %v2138_v41 = vsel %vm959_vm1, %v2136_v47, %v2107_v38 }
 0x482   : > { %v2144_v42 = vcombine.low %v2124_v39, %v2138_v41  ;;  %v2137_v55 = vsel %vm953_vm15, %v2135_v48, %v2101_v40 }
 0x484   : > { %v2151_v50 = vrot.slane %v2144_v42, %v2150_v30  ;;  %v909_v52 = vpop.permute.xlu0 %908 }
 0x485   : > { %v2109_v56 = vpop.permute.xlu1 %2108  ;;  %v960_v1 = vsel %vm959_vm1, %v3129_v28, %v909_v52 }
 0x486   : > { %v2158_v57 = vrot.slane %v2151_v50, %v2150_v30  ;;  %v2139_v58 = vsel %vm959_vm1, %v2137_v55, %v2109_v56 }
 0x487   : > { %v2159_v59 = vcombine.low %v2125_v6, %v2139_v58 }
 0x488   : > { %v917_v60 = vpop.permute.xlu0 %916  ;;  %2180 = vst.msk [vmem:[%s249_s8] sm:$0x3] %vm3274_vm2, %v2158_v57 }
 0x489   : > { %v2166_v61 = vrot.slane %v2159_v59, %v2150_v30  ;;  %v911_v63 = vpop.permute.xlu1 %910  ;;  %v963_v0 = vsel %vm962_vm3, %v960_v1, %v917_v60 }
 0x48a   : > { %965 = vst [vmem:[%s3288_s10] sm:$0x1] %v963_v0  ;;  %v961_v3 = vsel %vm959_vm1, %v3133_v32, %v911_v63 }
 0x48b   : > { %v2173_v28 = vrot.slane %v2166_v61, %v2150_v30 }
 0x48d   : > { %2181 = vst.msk [vmem:[%s249_s8 + $0x2] sm:$0x3] %vm3274_vm2, %v2173_v28  ;;  %v919_v4 = vpop.permute.xlu1 %918 }
 0x48e   : > { %v964_v49 = vsel %vm962_vm3, %v961_v3, %v919_v4 }
 0x48f   : > { %2732 = shalt.err (!%p2729_p3)
}
 0x490   : > { %s2733_s8 = scalar_lea.hbm %s3296_s17, 64  ;;  %s2737_s25 = scalar_lea.hbm %s3387_s5, 128 }
 0x491   : > { %p2734_p4 = scmp.ne.s32.totalorder %s3296_s17, %s2733_s8  ;;  %p2738_p9 = scmp.lt.u32.totalorder %s3296_s17, %s3387_s5 }
 0x492   : > { %p2739_p10 = scmp.lt.u32.totalorder %s2737_s25, %s2733_s8  ;;  %p2741_p12 = scmp.lt.u32.totalorder %s2733_s8, %s3296_s17 }
 0x493   : > { %p2735_p7 = pnand %p2734_p4, %p2910_p5 }
 0x494   : > { %p2740_p11 = por %p2739_p10, %p2738_p9 }
 0x495   : > { %p2736_p8 = pneg %p2735_p7 }
 0x496   : > { %p2742_p13 = por %p2741_p12, %p2740_p11 }
 0x498   : > { %p2743_p0 = pnand %p2742_p13, %p2736_p8 }
 0x49a   : > { %2746 = shalt.err (!%p2743_p0)
}
 0x49b   : > { %s2839_s6 = smov 2   ;;  %966 = vst [vmem:[%s3288_s10 + $0x1] sm:$0x1] %v964_v49  ;;  %s2183_s16 = scalar_lea.sflag [#allocation3], %s3259_s23 }
 0x49c   : > { %2571 = dma.vmem_to_hbm [thread:$0]  (%p2910_p5), %s3298_s9, 64, %s3296_s17, %s2188_s30, %s2832_s15, %s2832_s15, %s2839_s6  }
 0x49d   : > { %s2747_s8 = scalar_lea.vmem %s3300_s11, 32  ;;  %s2840_s12 = smov [#allocation2]  }
 0x49e   : > { %p2748_p1 = scmp.ne.s32.totalorder %s3300_s11, %s2747_s8  ;;  %s2751_s22 = sshll.u32 %s2840_s12, 4  ;;  %s2752_s22 = int_to_ptr.vmem [resolvable:$false] %s2751_s22 }
 0x49f   : > { %s2753_s25 = scalar_lea.vmem %s2752_s22, 64  ;;  %p2754_p4 = scmp.lt.s32.totalorder %s3300_s11, %s2752_s22 }
 0x4a0   : > { %p2749_p2 = pnand %p2748_p1, %p2910_p5  ;;  %p2755_p7 = scmp.lt.s32.totalorder %s2753_s25, %s2747_s8 }
 0x4a2   : > { %p2750_p3 = pneg %p2749_p2  ;;  %p2756_p8 = por %p2755_p7, %p2754_p4 }
 0x4a4   : > { %p2757_p9 = pnand %p2756_p8, %p2750_p3 }
 0x4a6   : > { %2760 = shalt.err (!%p2757_p9)
}
 0x4a7   : > { %s2761_s15 = scalar_lea.hbm %s3309_s26, 32  ;;  %s2765_s17 = scalar_lea.hbm %s3386_s4, 64 }
 0x4a8   : > { %p2762_p10 = scmp.ne.s32.totalorder %s3309_s26, %s2761_s15  ;;  %p2766_p13 = scmp.lt.u32.totalorder %s3309_s26, %s3386_s4 }
 0x4a9   : > { %p2767_p0 = scmp.lt.u32.totalorder %s2765_s17, %s2761_s15  ;;  %p2769_p2 = scmp.lt.u32.totalorder %s2761_s15, %s3309_s26 }
 0x4aa   : > { %p2763_p11 = pnand %p2762_p10, %p2910_p5 }
 0x4ab   : > { %p2768_p1 = por %p2767_p0, %p2766_p13 }
 0x4ac   : > { %p2764_p12 = pneg %p2763_p11 }
 0x4ad   : > { %p2770_p3 = por %p2769_p2, %p2768_p1 }
 0x4af   : > { %p2771_p4 = pnand %p2770_p3, %p2764_p12 }
 0x4b1   : > { %2774 = shalt.err (!%p2771_p4)
}
 0x4b2   : > { %s2841_s13 = smov 1  }
 0x4b3   : > { %2570 = dma.vmem_to_hbm [thread:$0]  (%p2910_p5), %s3300_s11, 32, %s3309_s26, %s2183_s16, %s2831_s14, %s2831_s14, %s2841_s13  }
 0x4b4 PF: > { %p2581_p7 = scmp.ge.s32.totalorder %s2813_s21, 2  ;;  %s2233_s6 = sand.u32 1, %s2801_s18  }
 0x4b5   : > { %s2234_s8 = scalar_lea.sflag [#allocation3], %s2233_s6 }
 0x4b6   : > { %p2575_p8 = pnand %p2581_p7, %p2914_p6 }
 0x4b8   : > { %2792 = dma.done.wait (!%p2575_p8), %s2234_s8, 32  }
 0x4b9   : > { %2794 = vsyncadd (!%p2575_p8), %s2234_s8, 4294967264  ;;  %s2243_s12 = scalar_lea.sflag [#allocation5], %s2233_s6 }
 0x4ba   : > { %2796 = dma.done.wait (!%p2575_p8), %s2243_s12, 64  }
 0x4bb   : > { %2798 = vsyncadd (!%p2575_p8), %s2243_s12, 4294967232  ;;  %p19_p5 = scmp.ge.s32.totalorder %s2897_s24, 4   ;;  %s3394_s18 = smov %s2805_s19 }
 0x4bc   : > { %s3395_s19 = smov %s2809_s20  ;;  %s3396_s20 = smov %s2908_s27 }
 0x4bd   : > { %s3397_s21 = smov %s2897_s24  ;;  %21 = sbr.rel (!%p19_p5) target bundleno = 5 (0x5), region = 91 }
 0x4c4   :  { %2248 = vsyncpa [#allocation3], 1 }
 0x4c5   :  { %2250 = vsyncpa [#allocation3 + $0x1], 1 }
 0x4c6   :  { %2251 = vsyncpa [#allocation5], 1 }
 0x4c7   :  { %2253 = vsyncpa [#allocation5 + $0x1], 1 }

</bundles_post_ra>
